<compile_context>
chip_gen: v7x
topology: tpu7x:2x2x1
jax: 0.10.0
libtpu: 0.0.40
codegen_flags: <defaults>
</compile_context>

<pallas_src>
import functools

import jax
import jax.numpy as jnp
from jax.experimental import pallas as pl
from jax.experimental.pallas import tpu as pltpu

BN_EPS = 1e-5          # nn.BatchNorm1d default
NEG_BIG = -1e30        # finite "-inf" init for the online-softmax running max
MASK_SQ = 1e30         # squared-norm sentinel: padded candidates -> dist ~1e15 -> p == 0
LANE = 128
SUBLANE_BF16 = 16


def _round_up(x, m):
    return (x + m - 1) // m * m


def _vmem_limit_bytes(rough_need):
    # >= 32 MiB (v5e's default scoped limit is only 16 MiB), <= 56 MiB so we stay
    # under v7x's 64 MiB physical VMEM per TensorCore.
    return int(min(max(2 * int(rough_need), 32 * 1024 * 1024), 56 * 1024 * 1024))


# ---------------------------------------------------------------------------
# Shared in-kernel helper: encoder Linear + n_blocks*(Linear->ReLU->Linear).
# All BatchNorms already folded into the weights, so this is matmul+bias+ReLU.
# MXU operands bf16, accumulation f32.
# ---------------------------------------------------------------------------
def _encode(h, enc_w_ref, enc_b_ref, block_refs):
    h = jnp.dot(h.astype(jnp.bfloat16), enc_w_ref[...],
                preferred_element_type=jnp.float32) + enc_b_ref[...]
    n_blocks = len(block_refs) // 4
    for b in range(n_blocks):
        w1_ref, b1_ref, w2_ref, b2_ref = block_refs[4 * b: 4 * b + 4]
        z = jnp.dot(h.astype(jnp.bfloat16), w1_ref[...],
                    preferred_element_type=jnp.float32) + b1_ref[...]
        z = jnp.maximum(z, 0.0)
        h = jnp.dot(z.astype(jnp.bfloat16), w2_ref[...],
                    preferred_element_type=jnp.float32) + b2_ref[...]
    return h


# ---------------------------------------------------------------------------
# Kernel 1: row encoder (used for both queries and candidates).
# Outputs bf16 encodings and f32 squared norms (hoists x^2 / c^2 out of the
# streaming kernel entirely).
# ---------------------------------------------------------------------------
def _encoder_kernel(x_ref, enc_w_ref, enc_b_ref, *rest):
    block_refs = rest[:-2]
    enc_out_ref, sq_out_ref = rest[-2], rest[-1]
    h = _encode(x_ref[...], enc_w_ref, enc_b_ref, block_refs)   # [T, dim_pad] f32
    hb = h.astype(jnp.bfloat16)
    enc_out_ref[...] = hb
    hf = hb.astype(jnp.float32)                                 # norms consistent with bf16 stream
    sq_out_ref[...] = jnp.sum(hf * hf, axis=-1, keepdims=True)


def _run_encoder(rows_bf16, weight_args, tile, dim_pad, weight_bytes):
    rows, d_in = rows_bf16.shape
    n_t = rows // tile
    in_specs = ([pl.BlockSpec((tile, d_in), lambda i: (i, 0))]
                # Weights: whole arrays resident in VMEM, no double buffering.
                + [pl.BlockSpec(memory_space=pltpu.MemorySpace.VMEM)
                   for _ in weight_args])
    rough_need = (weight_bytes
                  + 2 * tile * (d_in * 2 + dim_pad * 2 + 4)
                  + 4 * tile * dim_pad * 4)
    return pl.pallas_call(
        _encoder_kernel,
        grid=(n_t,),
        in_specs=in_specs,
        out_specs=(pl.BlockSpec((tile, dim_pad), lambda i: (i, 0)),
                   pl.BlockSpec((tile, 1), lambda i: (i, 0))),
        out_shape=(jax.ShapeDtypeStruct((rows, dim_pad), jnp.bfloat16),
                   jax.ShapeDtypeStruct((rows, 1), jnp.float32)),
        compiler_params=pltpu.CompilerParams(
            dimension_semantics=("parallel",),
            vmem_limit_bytes=_vmem_limit_bytes(rough_need)),
    )(rows_bf16, *weight_args)


# ---------------------------------------------------------------------------
# Kernel 2: streaming NCA head.  grid = (split, query_tile, cand_tile).
# Emits per-(split, query-tile) online-softmax partials (m, l, acc).
# ---------------------------------------------------------------------------
def _nca_stream_kernel(xq_ref, xsq_ref, c_ref, csq_ref, cy_ref,
                       m_out_ref, l_out_ref, acc_out_ref,
                       m_sc, l_sc, acc_sc, *, inv_t, classification):
    ci = pl.program_id(2)

    @pl.when(ci == 0)
    def _init():
        m_sc[...] = jnp.full(m_sc.shape, NEG_BIG, jnp.float32)
        l_sc[...] = jnp.zeros(l_sc.shape, jnp.float32)
        acc_sc[...] = jnp.zeros(acc_sc.shape, jnp.float32)

    x = xq_ref[...]                                   # [TB, dim_pad] bf16
    c = c_ref[...]                                    # [TN, dim_pad] bf16

    # Squared euclidean distance: precomputed norms + one bf16 MXU matmul.
    xc = jax.lax.dot_general(x, c, (((1,), (1,)), ((), ())),
                             preferred_element_type=jnp.float32)   # [TB, TN]
    d2 = jnp.maximum(xsq_ref[...] + csq_ref[...] - 2.0 * xc, 0.0)
    # Padded candidates carry csq == 1e30 -> neg ~ -1e15 -> exp underflows to 0.
    neg = -jnp.sqrt(d2) * inv_t

    # Online softmax update (flash-attention pattern).
    m_prev = m_sc[...]
    m_new = jnp.maximum(m_prev, jnp.max(neg, axis=-1, keepdims=True))
    alpha = jnp.exp(m_prev - m_new)
    p = jnp.exp(neg - m_new)
    l_sc[...] = alpha * l_sc[...] + jnp.sum(p, axis=-1, keepdims=True)

    if classification:
        tn = cy_ref.shape[0]
        d_out_pad = acc_sc.shape[1]
        classes = jax.lax.broadcasted_iota(jnp.int32, (tn, d_out_pad), 1)
        y_mat = (cy_ref[...] == classes).astype(jnp.bfloat16)
        acc_sc[...] = alpha * acc_sc[...] + jnp.dot(
            p.astype(jnp.bfloat16), y_mat, preferred_element_type=jnp.float32)
    else:
        # Regression: labels are a [1, TN] row; width-1 accumulator, no matmul.
        acc_sc[...] = alpha * acc_sc[...] + jnp.sum(
            p * cy_ref[...], axis=-1, keepdims=True)
    m_sc[...] = m_new

    @pl.when(ci == pl.num_programs(2) - 1)
    def _finalize():
        m_out_ref[...] = m_sc[...]
        l_out_ref[...] = l_sc[...]
        acc_out_ref[...] = acc_sc[...]


# ---------------------------------------------------------------------------
# Host-side parameter prep: fold every BatchNorm into the adjacent Linear,
# zero-pad feature dims to 128 lanes, cast MXU weights to bf16.
# ---------------------------------------------------------------------------
def prepare_params(params):
    enc_w, enc_b = params["enc_w"], params["enc_b"]
    d_in, dim = enc_w.shape
    dim_pad = _round_up(dim, LANE)
    n_blocks = len(params["blocks"])

    def pad2(a, r, c):
        return jnp.pad(a, ((0, r - a.shape[0]), (0, c - a.shape[1])))

    out = {
        "enc_w": pad2(enc_w, d_in, dim_pad).astype(jnp.bfloat16),
        "enc_b": pad2(enc_b, 1, dim_pad).astype(jnp.float32),
        "blocks": [],
    }

    if n_blocks > 0:
        fb = params["final_bn"]
        sf = fb["gamma"] * jax.lax.rsqrt(fb["var"] + BN_EPS)
        tf = fb["beta"] - fb["mean"] * sf

    for bi, blk in enumerate(params["blocks"]):
        d_block = blk["w1"].shape[1]
        db_pad = _round_up(d_block, LANE)
        s = blk["gamma"] * jax.lax.rsqrt(blk["var"] + BN_EPS)    # (1, dim)
        t = blk["beta"] - blk["mean"] * s
        w1f = blk["w1"] * s.T                                    # fold BN into w1
        b1f = t @ blk["w1"] + blk["b1"]
        w2f, b2f = blk["w2"], blk["b2"]
        if bi == n_blocks - 1:                                   # fold final BN into last w2/b2
            w2f = w2f * sf
            b2f = b2f * sf + tf
        out["blocks"].append({
            "w1": pad2(w1f, dim_pad, db_pad).astype(jnp.bfloat16),
            "b1": pad2(b1f, 1, db_pad).astype(jnp.float32),
            "w2": pad2(w2f, db_pad, dim_pad).astype(jnp.bfloat16),
            "b2": pad2(b2f, 1, dim_pad).astype(jnp.float32),
        })
    return out


# ---------------------------------------------------------------------------
# Full forward (inference).
# ---------------------------------------------------------------------------
def modern_nca_forward(fparams, x, candidate_x, candidate_y, *,
                       d_out, temperature, tile_n=512, candidate_splits=None):
    dim_pad = fparams["enc_w"].shape[1]
    d_in = x.shape[1]
    B, N = x.shape[0], candidate_x.shape[0]
    classification = d_out > 1
    acc_w = _round_up(d_out, LANE) if classification else 1

    # --- tiling ------------------------------------------------------------
    TB = min(LANE, _round_up(B, SUBLANE_BF16))
    B_pad = _round_up(B, TB)
    n_qt = B_pad // TB

    TN = min(tile_n, _round_up(N, SUBLANE_BF16))
    n_ct_total = (N + TN - 1) // TN
    if candidate_splits is None:
        # Extra "parallel" split of the candidate reduction so a 2nd TensorCore
        # (v7x / megacore) has work when there is only one query tile.
        candidate_splits = 2 if (n_qt == 1 and n_ct_total >= 2) else 1
    S = max(int(candidate_splits), 1)
    if S > 1 or TN < N:
        TN = _round_up(TN, LANE)     # sub-blocks of the (1, N_pad) rows must be lane-aligned
    N_pad = _round_up(N, TN * S)
    n_ci = N_pad // (TN * S)

    weight_args = [fparams["enc_w"], fparams["enc_b"]]
    for blk in fparams["blocks"]:
        weight_args += [blk["w1"], blk["b1"], blk["w2"], blk["b2"]]
    weight_bytes = sum(int(w.size) * w.dtype.itemsize for w in weight_args)

    # HBM streams in bf16 (they feed bf16 MXU matmuls anyway).
    xp = jnp.pad(x.astype(jnp.bfloat16), ((0, B_pad - B), (0, 0)))
    cxp = jnp.pad(candidate_x.astype(jnp.bfloat16), ((0, N_pad - N), (0, 0)))

    # --- stage 1: encode queries and candidates ONCE ------------------------
    x_enc, x_sq = _run_encoder(xp, weight_args, TB, dim_pad, weight_bytes)
    c_enc, c_sq = _run_encoder(cxp, weight_args, TN, dim_pad, weight_bytes)

    # Candidate squared norms as a lane-major row; padding mask folded in as a
    # huge squared norm (distance ~1e15 -> softmax weight exactly 0).
    c_sq_row = c_sq.reshape(1, N_pad)
    c_sq_row = jnp.where(jnp.arange(N_pad)[None, :] < N, c_sq_row, MASK_SQ)

    if classification:
        cy_arg = jnp.pad(candidate_y.reshape(-1, 1).astype(jnp.int32),
                         ((0, N_pad - N), (0, 0)))
        cy_spec = pl.BlockSpec((TN, 1), lambda si, qi, ci: (si * n_ci + ci, 0))
    else:
        cy_arg = jnp.pad(candidate_y.reshape(1, -1).astype(jnp.float32),
                         ((0, 0), (0, N_pad - N)))
        cy_spec = pl.BlockSpec((1, TN), lambda si, qi, ci: (0, si * n_ci + ci))

    kern = functools.partial(_nca_stream_kernel,
                             inv_t=1.0 / float(temperature),
                             classification=classification)

    rough_need = (2 * (TB * dim_pad * 2 + TB * 4 + TN * dim_pad * 2 + TN * 8)
                  + 6 * TB * (acc_w + 2) * 4)
    flops = 2 * S * n_qt * n_ci * TB * TN * (dim_pad + acc_w)
    bytes_accessed = (S * n_qt * n_ci * TN * (dim_pad * 2 + 8)
                      + n_qt * TB * (dim_pad * 2 + 4)
                      + S * n_qt * TB * (acc_w + 2) * 4)

    # --- stage 2: streaming NCA head ----------------------------------------
    m_p, l_p, acc_p = pl.pallas_call(
        kern,
        grid=(S, n_qt, n_ci),
        in_specs=[
            pl.BlockSpec((TB, dim_pad), lambda si, qi, ci: (qi, 0)),            # x_enc  bf16
            pl.BlockSpec((TB, 1), lambda si, qi, ci: (qi, 0)),                  # |x|^2  f32
            pl.BlockSpec((TN, dim_pad), lambda si, qi, ci: (si * n_ci + ci, 0)),  # c_enc bf16
            pl.BlockSpec((1, TN), lambda si, qi, ci: (0, si * n_ci + ci)),      # |c|^2  f32 (+mask)
            cy_spec,                                                            # labels
        ],
        out_specs=(
            pl.BlockSpec((None, TB, 1), lambda si, qi, ci: (si, qi, 0)),
            pl.BlockSpec((None, TB, 1), lambda si, qi, ci: (si, qi, 0)),
            pl.BlockSpec((None, TB, acc_w), lambda si, qi, ci: (si, qi, 0)),
        ),
        out_shape=(
            jax.ShapeDtypeStruct((S, B_pad, 1), jnp.float32),
            jax.ShapeDtypeStruct((S, B_pad, 1), jnp.float32),
            jax.ShapeDtypeStruct((S, B_pad, acc_w), jnp.float32),
        ),
        scratch_shapes=[pltpu.VMEM((TB, 1), jnp.float32),
                        pltpu.VMEM((TB, 1), jnp.float32),
                        pltpu.VMEM((TB, acc_w), jnp.float32)],
        compiler_params=pltpu.CompilerParams(
            dimension_semantics=("parallel", "parallel", "arbitrary"),
            vmem_limit_bytes=_vmem_limit_bytes(rough_need)),
        cost_estimate=pl.CostEstimate(
            flops=int(flops),
            transcendentals=int(S * n_qt * n_ci * TB * TN),
            bytes_accessed=int(bytes_accessed)),
    )(x_enc, x_sq, c_enc, c_sq_row, cy_arg)

    # --- merge per-split online-softmax partials (exact f32 epilogue) -------
    m_star = jnp.max(m_p, axis=0, keepdims=True)          # (1, B_pad, 1)
    scale = jnp.exp(m_p - m_star)                          # all-padding splits -> 0
    denom = jnp.sum(l_p * scale, axis=0)                   # (B_pad, 1)
    mix = jnp.sum(acc_p * scale, axis=0) / denom           # (B_pad, acc_w)
    if classification:
        return jnp.log(mix + 1e-07)[:B, :d_out]
    return mix[:B, 0]


# ---------------------------------------------------------------------------
# Pure-JAX reference (module semantics, f32, un-folded BN) for validation.
# ---------------------------------------------------------------------------
def modern_nca_reference(params, x, candidate_x, candidate_y, *, d_out, temperature):
    def encode(h):
        h = h @ params["enc_w"] + params["enc_b"]
        for blk in params["blocks"]:
            s = blk["gamma"] * jax.lax.rsqrt(blk["var"] + BN_EPS)
            hn = (h - blk["mean"]) * s + blk["beta"]
            z = jnp.maximum(hn @ blk["w1"] + blk["b1"], 0.0)
            h = z @ blk["w2"] + blk["b2"]
        if params["blocks"]:
            fb = params["final_bn"]
            s = fb["gamma"] * jax.lax.rsqrt(fb["var"] + BN_EPS)
            h = (h - fb["mean"]) * s + fb["beta"]
        return h

    xe, ce = encode(x), encode(candidate_x)
    d2 = (jnp.sum(xe * xe, -1, keepdims=True) + jnp.sum(ce * ce, -1)[None, :]
          - 2.0 * xe @ ce.T)
    dist = jnp.sqrt(jnp.maximum(d2, 0.0)) / temperature
    p = jax.nn.softmax(-dist, axis=-1)
    if d_out > 1:
        y = jax.nn.one_hot(candidate_y, d_out, dtype=jnp.float32)
        return jnp.log(p @ y + 1e-07)
    return (p @ candidate_y.reshape(-1, 1).astype(jnp.float32))[:, 0]


# ---------------------------------------------------------------------------
# Deterministic synthetic parameters (module-style: raw Linear + BN params).
# ---------------------------------------------------------------------------
def make_params(key, d_in, dim, d_block, n_blocks):
    ks = iter(jax.random.split(key, 4 + 8 * n_blocks + 4))

    def rnd(shape, scale=0.1):
        return scale * jax.random.normal(next(ks), shape, jnp.float32)

    params = {
        "enc_w": rnd((d_in, dim)),
        "enc_b": rnd((1, dim)),
        "blocks": [],
        "final_bn": {
            "gamma": 1.0 + rnd((1, dim)),
            "beta": rnd((1, dim)),
            "mean": rnd((1, dim)),
            "var": 1.0 + jnp.abs(rnd((1, dim))),
        },
    }
    for _ in range(n_blocks):
        params["blocks"].append({
            "gamma": 1.0 + rnd((1, dim)),
            "beta": rnd((1, dim)),
            "mean": rnd((1, dim)),
            "var": 1.0 + jnp.abs(rnd((1, dim))),
            "w1": rnd((dim, d_block)),
            "b1": rnd((1, d_block)),
            "w2": rnd((d_block, dim)),
            "b2": rnd((1, dim)),
        })
    return params


if __name__ == "__main__":
    key = jax.random.PRNGKey(0)
    k_p, k_x, k_c, k_y = jax.random.split(key, 4)

    # Small, module-consistent shapes.
    B, N = 8, 64                 # query batch / candidate set size
    d_in, dim = 16, 32
    d_block, n_blocks = 64, 2
    d_out = 3
    temperature = 1.0

    params = make_params(k_p, d_in, dim, d_block, n_blocks)
    x = jax.random.normal(k_x, (B, d_in), jnp.float32)
    candidate_x = jax.random.normal(k_c, (N, d_in), jnp.float32)
    candidate_y = jax.random.randint(k_y, (N,), 0, d_out)

    fparams = prepare_params(params)

    # ---- classification, default (single split) --------------------------
    logits = modern_nca_forward(fparams, x, candidate_x, candidate_y,
                                d_out=d_out, temperature=temperature)
    logits = jax.block_until_ready(logits)
    assert logits.shape == (B, d_out)
    assert bool(jnp.all(jnp.isfinite(logits)))

    ref = modern_nca_reference(params, x, candidate_x, candidate_y,
                               d_out=d_out, temperature=temperature)
    max_err = float(jnp.max(jnp.abs(logits - ref)))
    assert max_err < 0.1, f"max_err={max_err}"

    # ---- classification, forced 2-way candidate split (v7x dual-TC path) --
    logits_split = modern_nca_forward(fparams, x, candidate_x, candidate_y,
                                      d_out=d_out, temperature=temperature,
                                      candidate_splits=2)
    logits_split = jax.block_until_ready(logits_split)
    max_err_split = float(jnp.max(jnp.abs(logits_split - ref)))
    assert max_err_split < 0.1, f"max_err_split={max_err_split}"

    # ---- regression path (d_out == 1) -------------------------------------
    candidate_y_reg = jax.random.normal(k_y, (N,), jnp.float32)
    out_reg = modern_nca_forward(fparams, x, candidate_x, candidate_y_reg,
                                 d_out=1, temperature=temperature)
    out_reg = jax.block_until_ready(out_reg)
    ref_reg = modern_nca_reference(params, x, candidate_x, candidate_y_reg,
                                   d_out=1, temperature=temperature)
    max_err_reg = float(jnp.max(jnp.abs(out_reg - ref_reg)))
    assert out_reg.shape == (B,)
    assert max_err_reg < 0.05, f"max_err_reg={max_err_reg}"

    print("KERNEL_OK")
</pallas_src>

<mosaic_0001>
module attributes {stable_mosaic.version = 11 : i64} {
  func.func @_encoder_kernel(%arg0: i32, %arg1: memref<16x16xbf16, #tpu.memory_space<vmem>>, %arg2: memref<16x128xbf16, #tpu.memory_space<vmem>>, %arg3: memref<1x128xf32, #tpu.memory_space<vmem>>, %arg4: memref<128x128xbf16, #tpu.memory_space<vmem>>, %arg5: memref<1x128xf32, #tpu.memory_space<vmem>>, %arg6: memref<128x128xbf16, #tpu.memory_space<vmem>>, %arg7: memref<1x128xf32, #tpu.memory_space<vmem>>, %arg8: memref<128x128xbf16, #tpu.memory_space<vmem>>, %arg9: memref<1x128xf32, #tpu.memory_space<vmem>>, %arg10: memref<128x128xbf16, #tpu.memory_space<vmem>>, %arg11: memref<1x128xf32, #tpu.memory_space<vmem>>, %arg12: memref<16x128xbf16, #tpu.memory_space<vmem>>, %arg13: memref<16x1xf32, #tpu.memory_space<vmem>>) attributes {dimension_semantics = [#tpu.dimension_semantics<parallel>], iteration_bounds = array<i64: 1>, scalar_prefetch = 0 : i64, scratch_operands = 0 : i64, tpu.core_type = #tpu.core_type<tc>, window_params = [{transform_indices = @transform_0, window_bounds = array<i64: 16, 16>}, {pipeline_mode = #tpu.pipeline_mode<synchronous>, transform_indices = @transform_1, window_bounds = array<i64: 16, 128>}, {pipeline_mode = #tpu.pipeline_mode<synchronous>, transform_indices = @transform_2, window_bounds = array<i64: 1, 128>}, {pipeline_mode = #tpu.pipeline_mode<synchronous>, transform_indices = @transform_3, window_bounds = array<i64: 128, 128>}, {pipeline_mode = #tpu.pipeline_mode<synchronous>, transform_indices = @transform_4, window_bounds = array<i64: 1, 128>}, {pipeline_mode = #tpu.pipeline_mode<synchronous>, transform_indices = @transform_5, window_bounds = array<i64: 128, 128>}, {pipeline_mode = #tpu.pipeline_mode<synchronous>, transform_indices = @transform_6, window_bounds = array<i64: 1, 128>}, {pipeline_mode = #tpu.pipeline_mode<synchronous>, transform_indices = @transform_7, window_bounds = array<i64: 128, 128>}, {pipeline_mode = #tpu.pipeline_mode<synchronous>, transform_indices = @transform_8, window_bounds = array<i64: 1, 128>}, {pipeline_mode = #tpu.pipeline_mode<synchronous>, transform_indices = @transform_9, window_bounds = array<i64: 128, 128>}, {pipeline_mode = #tpu.pipeline_mode<synchronous>, transform_indices = @transform_10, window_bounds = array<i64: 1, 128>}, {transform_indices = @transform_11, window_bounds = array<i64: 16, 128>}, {transform_indices = @transform_12, window_bounds = array<i64: 16, 1>}]} {
    %c0 = arith.constant 0 : index
    %c0_0 = arith.constant 0 : index
    %0 = vector.load %arg1[%c0, %c0_0] : memref<16x16xbf16, #tpu.memory_space<vmem>>, vector<16x16xbf16>
    %c0_1 = arith.constant 0 : index
    %c0_2 = arith.constant 0 : index
    %1 = vector.load %arg2[%c0_1, %c0_2] : memref<16x128xbf16, #tpu.memory_space<vmem>>, vector<16x128xbf16>
    %cst = arith.constant dense<0.000000e+00> : vector<16x128xf32>
    %2 = tpu.matmul %0, %1, %cst {dimension_numbers = #tpu.dot_dimension_numbers<[1], [0], [0], [1], [0, 0, 1, 1], [], []>} : vector<16x16xbf16>, vector<16x128xbf16>, vector<16x128xf32> -> vector<16x128xf32>
    %c0_3 = arith.constant 0 : index
    %c0_4 = arith.constant 0 : index
    %3 = vector.load %arg3[%c0_3, %c0_4] : memref<1x128xf32, #tpu.memory_space<vmem>>, vector<1x128xf32>
    %4 = vector.broadcast %3 : vector<1x128xf32> to vector<16x128xf32>
    %5 = arith.addf %2, %4 : vector<16x128xf32>
    %6 = arith.truncf %5 : vector<16x128xf32> to vector<16x128xbf16>
    %c0_5 = arith.constant 0 : index
    %c0_6 = arith.constant 0 : index
    %7 = vector.load %arg4[%c0_5, %c0_6] : memref<128x128xbf16, #tpu.memory_space<vmem>>, vector<128x128xbf16>
    %cst_7 = arith.constant dense<0.000000e+00> : vector<16x128xf32>
    %8 = tpu.matmul %6, %7, %cst_7 {dimension_numbers = #tpu.dot_dimension_numbers<[1], [0], [0], [1], [0, 0, 1, 1], [], []>} : vector<16x128xbf16>, vector<128x128xbf16>, vector<16x128xf32> -> vector<16x128xf32>
    %c0_8 = arith.constant 0 : index
    %c0_9 = arith.constant 0 : index
    %9 = vector.load %arg5[%c0_8, %c0_9] : memref<1x128xf32, #tpu.memory_space<vmem>>, vector<1x128xf32>
    %10 = vector.broadcast %9 : vector<1x128xf32> to vector<16x128xf32>
    %11 = arith.addf %8, %10 : vector<16x128xf32>
    %cst_10 = arith.constant 0.000000e+00 : f32
    %12 = vector.broadcast %cst_10 : f32 to vector<16x128xf32>
    %13 = arith.maximumf %11, %12 : vector<16x128xf32>
    %14 = arith.truncf %13 : vector<16x128xf32> to vector<16x128xbf16>
    %c0_11 = arith.constant 0 : index
    %c0_12 = arith.constant 0 : index
    %15 = vector.load %arg6[%c0_11, %c0_12] : memref<128x128xbf16, #tpu.memory_space<vmem>>, vector<128x128xbf16>
    %cst_13 = arith.constant dense<0.000000e+00> : vector<16x128xf32>
    %16 = tpu.matmul %14, %15, %cst_13 {dimension_numbers = #tpu.dot_dimension_numbers<[1], [0], [0], [1], [0, 0, 1, 1], [], []>} : vector<16x128xbf16>, vector<128x128xbf16>, vector<16x128xf32> -> vector<16x128xf32>
    %c0_14 = arith.constant 0 : index
    %c0_15 = arith.constant 0 : index
    %17 = vector.load %arg7[%c0_14, %c0_15] : memref<1x128xf32, #tpu.memory_space<vmem>>, vector<1x128xf32>
    %18 = vector.broadcast %17 : vector<1x128xf32> to vector<16x128xf32>
    %19 = arith.addf %16, %18 : vector<16x128xf32>
    %20 = arith.truncf %19 : vector<16x128xf32> to vector<16x128xbf16>
    %c0_16 = arith.constant 0 : index
    %c0_17 = arith.constant 0 : index
    %21 = vector.load %arg8[%c0_16, %c0_17] : memref<128x128xbf16, #tpu.memory_space<vmem>>, vector<128x128xbf16>
    %cst_18 = arith.constant dense<0.000000e+00> : vector<16x128xf32>
    %22 = tpu.matmul %20, %21, %cst_18 {dimension_numbers = #tpu.dot_dimension_numbers<[1], [0], [0], [1], [0, 0, 1, 1], [], []>} : vector<16x128xbf16>, vector<128x128xbf16>, vector<16x128xf32> -> vector<16x128xf32>
    %c0_19 = arith.constant 0 : index
    %c0_20 = arith.constant 0 : index
    %23 = vector.load %arg9[%c0_19, %c0_20] : memref<1x128xf32, #tpu.memory_space<vmem>>, vector<1x128xf32>
    %24 = vector.broadcast %23 : vector<1x128xf32> to vector<16x128xf32>
    %25 = arith.addf %22, %24 : vector<16x128xf32>
    %cst_21 = arith.constant 0.000000e+00 : f32
    %26 = vector.broadcast %cst_21 : f32 to vector<16x128xf32>
    %27 = arith.maximumf %25, %26 : vector<16x128xf32>
    %28 = arith.truncf %27 : vector<16x128xf32> to vector<16x128xbf16>
    %c0_22 = arith.constant 0 : index
    %c0_23 = arith.constant 0 : index
    %29 = vector.load %arg10[%c0_22, %c0_23] : memref<128x128xbf16, #tpu.memory_space<vmem>>, vector<128x128xbf16>
    %cst_24 = arith.constant dense<0.000000e+00> : vector<16x128xf32>
    %30 = tpu.matmul %28, %29, %cst_24 {dimension_numbers = #tpu.dot_dimension_numbers<[1], [0], [0], [1], [0, 0, 1, 1], [], []>} : vector<16x128xbf16>, vector<128x128xbf16>, vector<16x128xf32> -> vector<16x128xf32>
    %c0_25 = arith.constant 0 : index
    %c0_26 = arith.constant 0 : index
    %31 = vector.load %arg11[%c0_25, %c0_26] : memref<1x128xf32, #tpu.memory_space<vmem>>, vector<1x128xf32>
    %32 = vector.broadcast %31 : vector<1x128xf32> to vector<16x128xf32>
    %33 = arith.addf %30, %32 : vector<16x128xf32>
    %34 = arith.truncf %33 : vector<16x128xf32> to vector<16x128xbf16>
    %c0_27 = arith.constant 0 : index
    %c0_28 = arith.constant 0 : index
    %35 = vector.load %arg12[%c0_27, %c0_28] : memref<16x128xbf16, #tpu.memory_space<vmem>>, vector<16x128xbf16>
    tpu.vector_store %arg12[%c0_27, %c0_28], %34 {strides = array<i32>} : memref<16x128xbf16, #tpu.memory_space<vmem>>, vector<16x128xbf16>,
    %36 = arith.extf %34 : vector<16x128xbf16> to vector<16x128xf32>
    %37 = arith.mulf %36, %36 : vector<16x128xf32>
    %cst_29 = arith.constant dense<0.000000e+00> : vector<16xf32>
    %38 = vector.multi_reduction <add>, %37, %cst_29 [1] : vector<16x128xf32> to vector<16xf32>
    %39 = vector.shape_cast %38 : vector<16xf32> to vector<16x1xf32>
    %c0_30 = arith.constant 0 : index
    %c0_31 = arith.constant 0 : index
    %40 = vector.load %arg13[%c0_30, %c0_31] : memref<16x1xf32, #tpu.memory_space<vmem>>, vector<16x1xf32>
    tpu.vector_store %arg13[%c0_30, %c0_31], %39 {strides = array<i32>} : memref<16x1xf32, #tpu.memory_space<vmem>>, vector<16x1xf32>,
    return
  }
  func.func @transform_0(%arg0: i32) -> (i32, i32) {
    %c0_i32 = arith.constant 0 : i32
    %c0_i32_0 = arith.constant 0 : i32
    return %arg0, %c0_i32 : i32, i32
  }
  func.func @transform_1(%arg0: i32) -> (i32, i32) {
    %c0_i32 = arith.constant 0 : i32
    %c0_i32_0 = arith.constant 0 : i32
    %c0_i32_1 = arith.constant 0 : i32
    return %c0_i32, %c0_i32_0 : i32, i32
  }
  func.func @transform_2(%arg0: i32) -> (i32, i32) {
    %c0_i32 = arith.constant 0 : i32
    %c0_i32_0 = arith.constant 0 : i32
    %c0_i32_1 = arith.constant 0 : i32
    return %c0_i32, %c0_i32_0 : i32, i32
  }
  func.func @transform_3(%arg0: i32) -> (i32, i32) {
    %c0_i32 = arith.constant 0 : i32
    %c0_i32_0 = arith.constant 0 : i32
    %c0_i32_1 = arith.constant 0 : i32
    return %c0_i32, %c0_i32_0 : i32, i32
  }
  func.func @transform_4(%arg0: i32) -> (i32, i32) {
    %c0_i32 = arith.constant 0 : i32
    %c0_i32_0 = arith.constant 0 : i32
    %c0_i32_1 = arith.constant 0 : i32
    return %c0_i32, %c0_i32_0 : i32, i32
  }
  func.func @transform_5(%arg0: i32) -> (i32, i32) {
    %c0_i32 = arith.constant 0 : i32
    %c0_i32_0 = arith.constant 0 : i32
    %c0_i32_1 = arith.constant 0 : i32
    return %c0_i32, %c0_i32_0 : i32, i32
  }
  func.func @transform_6(%arg0: i32) -> (i32, i32) {
    %c0_i32 = arith.constant 0 : i32
    %c0_i32_0 = arith.constant 0 : i32
    %c0_i32_1 = arith.constant 0 : i32
    return %c0_i32, %c0_i32_0 : i32, i32
  }
  func.func @transform_7(%arg0: i32) -> (i32, i32) {
    %c0_i32 = arith.constant 0 : i32
    %c0_i32_0 = arith.constant 0 : i32
    %c0_i32_1 = arith.constant 0 : i32
    return %c0_i32, %c0_i32_0 : i32, i32
  }
  func.func @transform_8(%arg0: i32) -> (i32, i32) {
    %c0_i32 = arith.constant 0 : i32
    %c0_i32_0 = arith.constant 0 : i32
    %c0_i32_1 = arith.constant 0 : i32
    return %c0_i32, %c0_i32_0 : i32, i32
  }
  func.func @transform_9(%arg0: i32) -> (i32, i32) {
    %c0_i32 = arith.constant 0 : i32
    %c0_i32_0 = arith.constant 0 : i32
    %c0_i32_1 = arith.constant 0 : i32
    return %c0_i32, %c0_i32_0 : i32, i32
  }
  func.func @transform_10(%arg0: i32) -> (i32, i32) {
    %c0_i32 = arith.constant 0 : i32
    %c0_i32_0 = arith.constant 0 : i32
    %c0_i32_1 = arith.constant 0 : i32
    return %c0_i32, %c0_i32_0 : i32, i32
  }
  func.func @transform_11(%arg0: i32) -> (i32, i32) {
    %c0_i32 = arith.constant 0 : i32
    %c0_i32_0 = arith.constant 0 : i32
    return %arg0, %c0_i32 : i32, i32
  }
  func.func @transform_12(%arg0: i32) -> (i32, i32) {
    %c0_i32 = arith.constant 0 : i32
    %c0_i32_0 = arith.constant 0 : i32
    return %arg0, %c0_i32 : i32, i32
  }
}

</mosaic_0001>

<bundles_post_ra>
// kernel: tpu_custom_call.1
= control target key start
LH: loop header
LB: loop body
LE: loop exit
PB: predicated region body
PF: predicated region fallthrough
CT: control target
= control target key end

     0   :  { %18 = vsyncpa [#allocation3], 0  ;;  %s1340_s0 = inlined_call_operand.hbm [shape: bf16[16,16], index: 0, kind: input, shape index: {}]   ;;  %s1341_s1 = inlined_call_operand.hbm [shape: bf16[16,128], index: 1, kind: input, shape index: {}]   ;;  %s1342_s2 = inlined_call_operand.vmem [shape: f32[1,128], index: 2, kind: input, shape index: {}]   ;;  %s1343_s3 = inlined_call_operand.hbm [shape: bf16[128,128], index: 3, kind: input, shape index: {}]   ;;  %s1344_s4 = inlined_call_operand.vmem [shape: f32[1,128], index: 4, kind: input, shape index: {}]   ;;  %s1345_s5 = inlined_call_operand.hbm [shape: bf16[128,128], index: 5, kind: input, shape index: {}]   ;;  %s1346_s6 = inlined_call_operand.vmem [shape: f32[1,128], index: 6, kind: input, shape index: {}]   ;;  %s1347_s7 = inlined_call_operand.hbm [shape: bf16[128,128], index: 7, kind: input, shape index: {}]   ;;  %s1348_s8 = inlined_call_operand.vmem [shape: f32[1,128], index: 8, kind: input, shape index: {}]   ;;  %s1349_s9 = inlined_call_operand.hbm [shape: bf16[128,128], index: 9, kind: input, shape index: {}]   ;;  %s1350_s10 = inlined_call_operand.vmem [shape: f32[1,128], index: 10, kind: input, shape index: {}]   ;;  %s1351_s11 = inlined_call_operand.hbm [shape: bf16[16,128], index: 11, kind: output, shape index: {0}]   ;;  %s1352_s12 = inlined_call_operand.vmem [shape: f32[16,1], index: 12, kind: output, shape index: {1}]  }
   0x1   :  { %19 = vsyncpa [#allocation6], 0 }
   0x2   :  { %20 = vsyncpa [#allocation9], 0 }
   0x3   :  { %21 = vsyncpa [#allocation12], 0 }
   0x4   :  { %22 = vsyncpa [#allocation4], 0  ;;  %s1074_s21 = smov [#allocation5]   ;;  %s1075_s23 = smov [#allocation8]  }
   0x5   :  { %s40_s22 = sshll.u32 %s1074_s21, 4  ;;  %s68_s24 = sshll.u32 %s1075_s23, 4  ;;  %s41_s22 = int_to_ptr.vmem [resolvable:$true] %s40_s22  ;;  %s1150_s24 = int_to_ptr.vmem [resolvable:$true] %s68_s24 }
   0x6   :  { %s910_s27 = scalar_lea.hbm %s1341_s1, 128 }
   0x7   :  { %p911_p0 = scmp.ne.s32.totalorder %s1341_s1, %s910_s27  ;;  %p914_p1 = scmp.lt.u32.totalorder %s910_s27, %s1341_s1 }
   0x9   :  { %p916_p2 = pnand %p914_p1, %p911_p0 }
   0xb   :  { %919 = shalt.err (!%p916_p2)
}
   0xc   :  { %s920_s14 = scalar_lea.vmem %s41_s22, 128  ;;  %p925_p4 = scmp.lt.s32.totalorder %s41_s22, %s41_s22 }
   0xd   :  { %p921_p3 = scmp.ne.s32.totalorder %s41_s22, %s920_s14  ;;  %p926_p5 = scmp.lt.s32.totalorder %s920_s14, %s920_s14 }
   0xf   :  { %p927_p6 = por %p926_p5, %p925_p4 }
  0x11   :  { %p928_p7 = pnand %p927_p6, %p921_p3 }
  0x13   :  { %931 = shalt.err (!%p928_p7)
}
  0x14   :  { %s1076_s15 = smov 64   ;;  %s1077_s16 = smov 4  }
  0x15   :  { %46 = dma.hbm_to_vmem [thread:$0]  %s1341_s1, 128, %s41_s22, [#allocation6], %s1076_s15, %s1076_s15, %s1077_s16  }
  0x16   :  { %s932_s21 = scalar_lea.hbm %s1345_s5, 1024 }
  0x17   :  { %p933_p8 = scmp.ne.s32.totalorder %s1345_s5, %s932_s21  ;;  %p936_p9 = scmp.lt.u32.totalorder %s932_s21, %s1345_s5 }
  0x19   :  { %p938_p10 = pnand %p936_p9, %p933_p8 }
  0x1b   :  { %941 = shalt.err (!%p938_p10)
}
  0x1c   :  { %s942_s28 = scalar_lea.vmem %s1150_s24, 1024  ;;  %p947_p12 = scmp.lt.s32.totalorder %s1150_s24, %s1150_s24 }
  0x1d   :  { %p943_p11 = scmp.ne.s32.totalorder %s1150_s24, %s942_s28  ;;  %p948_p13 = scmp.lt.s32.totalorder %s942_s28, %s942_s28 }
  0x1f   :  { %p949_p0 = por %p948_p13, %p947_p12 }
  0x21   :  { %p950_p1 = pnand %p949_p0, %p943_p11 }
  0x23   :  { %953 = shalt.err (!%p950_p1)
}
  0x24   :  { %74 = dma.hbm_to_vmem [thread:$0]  %s1345_s5, 1024, %s1150_s24, [#allocation9], %s1076_s15, %s1076_s15, %s1077_s16  }
  0x25   :  { %s1078_s29 = smov [#allocation2]   ;;  %s1079_s13 = smov [#allocation7]  }
  0x26   :  { %s28_s30 = sshll.u32 %s1078_s29, 4  ;;  %s54_s14 = sshll.u32 %s1079_s13, 4  ;;  %s29_s30 = int_to_ptr.vmem [resolvable:$true] %s28_s30  ;;  %s1187_s14 = int_to_ptr.vmem [resolvable:$true] %s54_s14 }
  0x27   :  { %s954_s19 = scalar_lea.hbm %s1340_s0, 128 }
  0x28   :  { %p955_p2 = scmp.ne.s32.totalorder %s1340_s0, %s954_s19  ;;  %p958_p3 = scmp.lt.u32.totalorder %s954_s19, %s1340_s0 }
  0x2a   :  { %p960_p4 = pnand %p958_p3, %p955_p2 }
  0x2c   :  { %963 = shalt.err (!%p960_p4)
}
  0x2d   :  { %s964_s5 = scalar_lea.vmem %s29_s30, 128  ;;  %p969_p6 = scmp.lt.s32.totalorder %s29_s30, %s29_s30 }
  0x2e   :  { %p965_p5 = scmp.ne.s32.totalorder %s29_s30, %s964_s5  ;;  %p970_p7 = scmp.lt.s32.totalorder %s964_s5, %s964_s5 }
  0x30   :  { %p971_p8 = por %p970_p7, %p969_p6 }
  0x32   :  { %p972_p9 = pnand %p971_p8, %p965_p5 }
  0x34   :  { %975 = shalt.err (!%p972_p9)
}
  0x35   :  { %34 = dma.hbm_to_vmem [thread:$0]  %s1340_s0, 128, %s29_s30, [#allocation3], %s1076_s15, %s1076_s15, %s1077_s16  }
  0x36   :  { %s976_s1 = scalar_lea.hbm %s1343_s3, 1024 }
  0x37   :  { %p977_p10 = scmp.ne.s32.totalorder %s1343_s3, %s976_s1  ;;  %p980_p11 = scmp.lt.u32.totalorder %s976_s1, %s1343_s3 }
  0x39   :  { %p982_p12 = pnand %p980_p11, %p977_p10 }
  0x3b   :  { %985 = shalt.err (!%p982_p12)
}
  0x3c   :  { %s986_s18 = scalar_lea.vmem %s1187_s14, 1024  ;;  %p991_p0 = scmp.lt.s32.totalorder %s1187_s14, %s1187_s14 }
  0x3d   :  { %p987_p13 = scmp.ne.s32.totalorder %s1187_s14, %s986_s18  ;;  %p992_p1 = scmp.lt.s32.totalorder %s986_s18, %s986_s18 }
  0x3f   :  { %p993_p2 = por %p992_p1, %p991_p0 }
  0x41   :  { %p994_p3 = pnand %p993_p2, %p987_p13 }
  0x43   :  { %997 = shalt.err (!%p994_p3)
}
  0x44   :  { %60 = dma.hbm_to_vmem [thread:$0]  %s1343_s3, 1024, %s1187_s14, [#allocation6], %s1076_s15, %s1076_s15, %s1077_s16  }
  0x45   :  { %s1080_s19 = smov [#allocation10]   ;;  %s1081_s21 = smov [#allocation11]  }
  0x46   :  { %s82_s20 = sshll.u32 %s1080_s19, 4  ;;  %s96_s23 = sshll.u32 %s1081_s21, 4  ;;  %s83_s20 = int_to_ptr.vmem [resolvable:$true] %s82_s20  ;;  %s1224_s23 = int_to_ptr.vmem [resolvable:$true] %s96_s23 }
  0x47   :  { %s998_s24 = scalar_lea.hbm %s1347_s7, 1024 }
  0x48   :  { %p999_p4 = scmp.ne.s32.totalorder %s1347_s7, %s998_s24  ;;  %p1002_p5 = scmp.lt.u32.totalorder %s998_s24, %s1347_s7 }
  0x4a   :  { %p1004_p6 = pnand %p1002_p5, %p999_p4 }
  0x4c   :  { %1007 = shalt.err (!%p1004_p6)
}
  0x4d   :  { %s1008_s3 = scalar_lea.vmem %s83_s20, 1024  ;;  %p1013_p8 = scmp.lt.s32.totalorder %s83_s20, %s83_s20 }
  0x4e   :  { %p1009_p7 = scmp.ne.s32.totalorder %s83_s20, %s1008_s3  ;;  %p1014_p9 = scmp.lt.s32.totalorder %s1008_s3, %s1008_s3 }
  0x50   :  { %p1015_p10 = por %p1014_p9, %p1013_p8 }
  0x52   :  { %p1016_p11 = pnand %p1015_p10, %p1009_p7 }
  0x54   :  { %1019 = shalt.err (!%p1016_p11)
}
  0x55   :  { %88 = dma.hbm_to_vmem [thread:$0]  %s1347_s7, 1024, %s83_s20, [#allocation9], %s1076_s15, %s1076_s15, %s1077_s16  }
  0x56   :  { %s1020_s17 = scalar_lea.hbm %s1349_s9, 1024 }
  0x57   :  { %p1021_p12 = scmp.ne.s32.totalorder %s1349_s9, %s1020_s17  ;;  %p1024_p13 = scmp.lt.u32.totalorder %s1020_s17, %s1349_s9 }
  0x59   :  { %p1026_p0 = pnand %p1024_p13, %p1021_p12 }
  0x5b   :  { %1029 = shalt.err (!%p1026_p0)
}
  0x5c   :  { %s1030_s21 = scalar_lea.vmem %s1224_s23, 1024  ;;  %p1035_p2 = scmp.lt.s32.totalorder %s1224_s23, %s1224_s23 }
  0x5d   :  { %p1031_p1 = scmp.ne.s32.totalorder %s1224_s23, %s1030_s21  ;;  %p1036_p3 = scmp.lt.s32.totalorder %s1030_s21, %s1030_s21 }
  0x5f   :  { %p1037_p4 = por %p1036_p3, %p1035_p2 }
  0x61   :  { %p1038_p5 = pnand %p1037_p4, %p1031_p1 }
  0x63   :  { %1041 = shalt.err (!%p1038_p5)
}
  0x64   :  { %102 = dma.hbm_to_vmem [thread:$0]  %s1349_s9, 1024, %s1224_s23, [#allocation12], %s1076_s15, %s1076_s15, %s1077_s16  }
  0x65   :  { %1064 = dma.done.wait [#allocation3], 128  }
  0x66   :  { %1065 = vsyncadd [#allocation3], 4294967168 }
  0x67   :  { %1066 = dma.done.wait [#allocation6], 1152  }
  0x68   :  { %1067 = vsyncadd [#allocation6], 4294966144 }
  0x69   :  { %1068 = dma.done.wait [#allocation9], 2048  }
  0x6a   :  { %1069 = vsyncadd [#allocation9], 4294965248 }
  0x6b   :  { %1070 = dma.done.wait [#allocation12], 1024  }
  0x6c   :  { %1071 = vsyncadd [#allocation12], 4294966272  ;;  %v1082_v0 = vmov 0.0   ;;  %vm1083_vm0 = vmmov 0   ;;  %v876_v1 = vld [vmem:[#allocation5] sm:$0xff]   ;;  %v877_v2 = vld [vmem:[#allocation2] sm:$0xff]  }
  0x6d   :  { %779 = vmatprep.subr.bf16.mxu0 %v1082_v0  ;;  %781 = vmatprep.mubr.msk.bf16.mxu0 %vm1083_vm0, %v1082_v0  ;;  %vm146_vm1 = vcmask 130048   ;;  %v878_v3 = vld [vmem:[#allocation7] sm:$0xff]   ;;  %v879_v4 = vld [vmem:[#allocation7 + $0x8] sm:$0xff]   ;;  %v880_v5 = vld [vmem:[#allocation7 + $0x10] sm:$0xff]  }
  0x6e   :  { %785 = vmatprep.subr.bf16.mxu1 %v1082_v0  ;;  %801 = vmatprep.mubr.msk.bf16.mxu1 %vm1083_vm0, %v1082_v0  ;;  %v881_v6 = vld [vmem:[#allocation7 + $0x18] sm:$0xff]   ;;  %v882_v7 = vld [vmem:[#allocation7 + $0x20] sm:$0xff]   ;;  %v883_v8 = vld [vmem:[#allocation7 + $0x28] sm:$0xff]  }
  0x6f   :  { %780 = vmatpush3.bf16.msra.mxu0 %v876_v1  ;;  %786 = vmatpush3.bf16.msra.mxu1 %v878_v3  ;;  %v884_v9 = vld [vmem:[#allocation7 + $0x30] sm:$0xff]   ;;  %v885_v10 = vld [vmem:[#allocation7 + $0x38] sm:$0xff]   ;;  %v886_v11 = vld [vmem:[#allocation8] sm:$0xff]  }
  0x70   :  { %805 = vmatprep.subr.bf16.mxu0 %v1082_v0  ;;  %787 = vmatprep.subr.bf16.mxu1 %v1082_v0  ;;  %v887_v12 = vld [vmem:[#allocation8 + $0x8] sm:$0xff]   ;;  %v888_v13 = vld [vmem:[#allocation8 + $0x10] sm:$0xff]   ;;  %v889_v14 = vld [vmem:[#allocation8 + $0x18] sm:$0xff]  }
  0x71   :  { %v890_v15 = vld [vmem:[#allocation8 + $0x20] sm:$0xff]   ;;  %v891_v16 = vld [vmem:[#allocation8 + $0x28] sm:$0xff]   ;;  %v892_v25 = vld [vmem:[#allocation8 + $0x30] sm:$0xff]  }
  0x72   :  { %782 = vmatmul.mubr.msk.bf16.vlgmr.msra.gmra.mrb[0].mxu0 %vm146_vm1, %v877_v2  ;;  %v692_v17 = vld [vmem:[%s1342_s2] ss:$0 sm:$0xff]  ;;  %v893_v26 = vld [vmem:[#allocation8 + $0x38] sm:$0xff]   ;;  %v895_v28 = vld [vmem:[#allocation10 + $0x8] sm:$0xff]  }
  0x73   :  { %821 = vmatprep.mubr.msk.bf16.mxu0 %vm1083_vm0, %v1082_v0  ;;  %788 = vmatpush3.bf16.msra.mxu1 %v879_v4  ;;  %v894_v27 = vld [vmem:[#allocation10] sm:$0xff]   ;;  %v896_v29 = vld [vmem:[#allocation10 + $0x10] sm:$0xff]   ;;  %v897_v30 = vld [vmem:[#allocation10 + $0x18] sm:$0xff]  }
  0x74   :  { %789 = vmatprep.subr.bf16.mxu1 %v1082_v0  ;;  %806 = vmatpush3.bf16.msra.mxu0 %v886_v11  ;;  %v898_v31 = vld [vmem:[#allocation10 + $0x20] sm:$0xff]   ;;  %v899_v32 = vld [vmem:[#allocation10 + $0x28] sm:$0xff]   ;;  %v900_v43 = vld [vmem:[#allocation10 + $0x30] sm:$0xff]  }
  0x75   :  { %807 = vmatprep.subr.bf16.mxu0 %v1082_v0  ;;  %v696_v33 = vld [vmem:[%s1344_s4] ss:$0 sm:$0xff]  ;;  %v901_v44 = vld [vmem:[#allocation10 + $0x38] sm:$0xff]   ;;  %v903_v46 = vld [vmem:[#allocation11 + $0x8] sm:$0xff]  }
  0x76   :  { %v902_v45 = vld [vmem:[#allocation11] sm:$0xff]   ;;  %v904_v47 = vld [vmem:[#allocation11 + $0x10] sm:$0xff]   ;;  %v905_v48 = vld [vmem:[#allocation11 + $0x18] sm:$0xff]  }
  0x77   :  { %790 = vmatpush3.bf16.msra.mxu1 %v880_v5  ;;  %v906_v49 = vld [vmem:[#allocation11 + $0x20] sm:$0xff]   ;;  %v907_v50 = vld [vmem:[#allocation11 + $0x28] sm:$0xff]   ;;  %v908_v59 = vld [vmem:[#allocation11 + $0x30] sm:$0xff]  }
  0x78   :  { %791 = vmatprep.subr.bf16.mxu1 %v1082_v0  ;;  %808 = vmatpush3.bf16.msra.mxu0 %v887_v12  ;;  %v705_v51 = vld [vmem:[%s1346_s6] ss:$0 sm:$0xff]  ;;  %v909_v60 = vld [vmem:[#allocation11 + $0x38] sm:$0xff]  }
  0x79   :  { %809 = vmatprep.subr.bf16.mxu0 %v1082_v0  ;;  %v714_v61 = vld [vmem:[%s1348_s8] ss:$0 sm:$0xff]  ;;  %s1084_s8 = smov [#allocation13]  }
  0x7a   :  { %s673_s28 = sshll.u32 %s1084_s8, 4  ;;  %s674_s28 = int_to_ptr.vmem [resolvable:$true] %s673_s28 }
  0x7b   :  { %792 = vmatpush3.bf16.msra.mxu1 %v881_v6  ;;  %s1042_s1 = scalar_lea.vmem %s674_s28, 128  ;;  %p1047_p7 = scmp.lt.s32.totalorder %s674_s28, %s674_s28 }
  0x7c   :  { %793 = vmatprep.subr.bf16.mxu1 %v1082_v0  ;;  %810 = vmatpush3.bf16.msra.mxu0 %v888_v13  ;;  %p1043_p6 = scmp.ne.s32.totalorder %s674_s28, %s1042_s1  ;;  %p1048_p8 = scmp.lt.s32.totalorder %s1042_s1, %s1042_s1 }
  0x7d   :  { %811 = vmatprep.subr.bf16.mxu0 %v1082_v0 }
  0x7e   :  { %p1049_p9 = por %p1048_p8, %p1047_p7 }
  0x7f   :  { %794 = vmatpush3.bf16.msra.mxu1 %v882_v7 }
  0x80   :  { %795 = vmatprep.subr.bf16.mxu1 %v1082_v0  ;;  %812 = vmatpush3.bf16.msra.mxu0 %v889_v14  ;;  %p1050_p10 = pnand %p1049_p9, %p1043_p6 }
  0x81   :  { %813 = vmatprep.subr.bf16.mxu0 %v1082_v0 }
  0x83   :  { %796 = vmatpush3.bf16.msra.mxu1 %v883_v8 }
  0x84   :  { %797 = vmatprep.subr.bf16.mxu1 %v1082_v0  ;;  %814 = vmatpush3.bf16.msra.mxu0 %v890_v15 }
  0x85   :  { %815 = vmatprep.subr.bf16.mxu0 %v1082_v0 }
  0x87   :  { %798 = vmatpush3.bf16.msra.mxu1 %v884_v9 }
  0x88   :  { %799 = vmatprep.subr.bf16.mxu1 %v1082_v0  ;;  %816 = vmatpush3.bf16.msra.mxu0 %v891_v16 }
  0x89   :  { %817 = vmatprep.subr.bf16.mxu0 %v1082_v0 }
  0x8b   :  { %800 = vmatpush3.bf16.msra.mxu1 %v885_v10 }
  0x8c   :  { %825 = vmatprep.subr.bf16.mxu1 %v1082_v0  ;;  %818 = vmatpush3.bf16.msra.mxu0 %v892_v25 }
  0x8d   :  { %819 = vmatprep.subr.bf16.mxu0 %v1082_v0 }
  0x90   :  { %820 = vmatpush3.bf16.msra.mxu0 %v893_v26 }
  0x91   :  { %845 = vmatprep.subr.bf16.mxu0 %v1082_v0 }
 0x145   :  { %v184_v18 = vpop.f32.mrb[0].mxu0 }
 0x146   :  { %v783_v19 = vpop.f32.mrb[1].mxu0  ;;  %v185_v21 = vadd.f32 %v692_v17, %v184_v18 }
 0x147   :  { %v187_v20 = vpop.f32.mrb[2].mxu0 }
 0x148   :  { %v188_v22 = vadd.f32 %v692_v17, %v187_v20  ;;  %v784_v23 = vpop.f32.mrb[3].mxu0 }
 0x14a   :  { %v191_v24 = vpack.c.bf16 %v188_v22, %v185_v21 }
 0x14c   :  { %802 = vmatmul.mubr.bf16.vlgmr.msra.gmra.mrb[0].mxu1 %v191_v24 }
 0x14d   :  { %841 = vmatprep.mubr.msk.bf16.mxu1 %vm1083_vm0, %v1082_v0  ;;  %826 = vmatpush3.bf16.msra.mxu1 %v894_v27 }
 0x14e   :  { %827 = vmatprep.subr.bf16.mxu1 %v1082_v0 }
 0x151   :  { %828 = vmatpush3.bf16.msra.mxu1 %v895_v28 }
 0x152   :  { %829 = vmatprep.subr.bf16.mxu1 %v1082_v0 }
 0x155   :  { %830 = vmatpush3.bf16.msra.mxu1 %v896_v29 }
 0x156   :  { %831 = vmatprep.subr.bf16.mxu1 %v1082_v0 }
 0x159   :  { %832 = vmatpush3.bf16.msra.mxu1 %v897_v30 }
 0x15a   :  { %833 = vmatprep.subr.bf16.mxu1 %v1082_v0 }
 0x15d   :  { %834 = vmatpush3.bf16.msra.mxu1 %v898_v31 }
 0x15e   :  { %835 = vmatprep.subr.bf16.mxu1 %v1082_v0 }
 0x161   :  { %836 = vmatpush3.bf16.msra.mxu1 %v899_v32 }
 0x162   :  { %837 = vmatprep.subr.bf16.mxu1 %v1082_v0 }
 0x165   :  { %838 = vmatpush3.bf16.msra.mxu1 %v900_v43 }
 0x166   :  { %839 = vmatprep.subr.bf16.mxu1 %v1082_v0 }
 0x169   :  { %840 = vmatpush3.bf16.msra.mxu1 %v901_v44 }
 0x21f   :  { %v297_v34 = vpop.f32.mrb[0].mxu1 }
 0x220   :  { %v298_v35 = vadd.f32 %v696_v33, %v297_v34  ;;  %v803_v36 = vpop.f32.mrb[1].mxu1 }
 0x221   :  { %v300_v37 = vpop.f32.mrb[2].mxu1 }
 0x222   :  { %v301_v38 = vadd.f32 %v696_v33, %v300_v37  ;;  %v804_v39 = vpop.f32.mrb[3].mxu1  ;;  %v304_v40 = vmax.f32 %v298_v35, 0.0 }
 0x224   :  { %v305_v41 = vmax.f32 %v301_v38, 0.0 }
 0x226   :  { %v306_v42 = vpack.c.bf16 %v305_v41, %v304_v40 }
 0x228   :  { %822 = vmatmul.mubr.bf16.vlgmr.msra.gmra.mrb[4].mxu0 %v306_v42 }
 0x229   :  { %861 = vmatprep.mubr.msk.bf16.mxu0 %vm1083_vm0, %v1082_v0  ;;  %846 = vmatpush3.bf16.msra.mxu0 %v902_v45 }
 0x22a   :  { %847 = vmatprep.subr.bf16.mxu0 %v1082_v0 }
 0x22d   :  { %848 = vmatpush3.bf16.msra.mxu0 %v903_v46 }
 0x22e   :  { %849 = vmatprep.subr.bf16.mxu0 %v1082_v0 }
 0x231   :  { %850 = vmatpush3.bf16.msra.mxu0 %v904_v47 }
 0x232   :  { %851 = vmatprep.subr.bf16.mxu0 %v1082_v0 }
 0x235   :  { %852 = vmatpush3.bf16.msra.mxu0 %v905_v48 }
 0x236   :  { %853 = vmatprep.subr.bf16.mxu0 %v1082_v0 }
 0x239   :  { %854 = vmatpush3.bf16.msra.mxu0 %v906_v49 }
 0x23a   :  { %855 = vmatprep.subr.bf16.mxu0 %v1082_v0 }
 0x23d   :  { %856 = vmatpush3.bf16.msra.mxu0 %v907_v50 }
 0x23e   :  { %857 = vmatprep.subr.bf16.mxu0 %v1082_v0 }
 0x241   :  { %858 = vmatpush3.bf16.msra.mxu0 %v908_v59 }
 0x242   :  { %859 = vmatprep.subr.bf16.mxu0 %v1082_v0  ;;  %v723_v0 = vld [vmem:[%s1350_s10] ss:$0 sm:$0xff] }
 0x245   :  { %860 = vmatpush3.bf16.msra.mxu0 %v909_v60 }
 0x2fb   :  { %v412_v52 = vpop.f32.mrb[4].mxu0 }
 0x2fc   :  { %v823_v53 = vpop.f32.mrb[5].mxu0  ;;  %v413_v55 = vadd.f32 %v705_v51, %v412_v52 }
 0x2fd   :  { %v415_v54 = vpop.f32.mrb[6].mxu0 }
 0x2fe   :  { %v416_v56 = vadd.f32 %v705_v51, %v415_v54  ;;  %v824_v57 = vpop.f32.mrb[7].mxu0 }
 0x300   :  { %v419_v58 = vpack.c.bf16 %v416_v56, %v413_v55 }
 0x302   :  { %842 = vmatmul.mubr.bf16.vlgmr.msra.gmra.mrb[4].mxu1 %v419_v58 }
 0x3d5   :  { %v525_v62 = vpop.f32.mrb[4].mxu1 }
 0x3d6   :  { %v526_v63 = vadd.f32 %v714_v61, %v525_v62  ;;  %v843_v1 = vpop.f32.mrb[5].mxu1 }
 0x3d7   :  { %v528_v2 = vpop.f32.mrb[6].mxu1 }
 0x3d8   :  { %v529_v3 = vadd.f32 %v714_v61, %v528_v2  ;;  %v844_v4 = vpop.f32.mrb[7].mxu1  ;;  %v532_v5 = vmax.f32 %v526_v63, 0.0 }
 0x3da   :  { %v533_v6 = vmax.f32 %v529_v3, 0.0 }
 0x3dc   :  { %v534_v7 = vpack.c.bf16 %v533_v6, %v532_v5 }
 0x3de   :  { %862 = vmatmul.mubr.bf16.vlgmr.msra.gmra.mrb[8].mxu0 %v534_v7 }
 0x4b1   :  { %v640_v8 = vpop.f32.mrb[8].mxu0 }
 0x4b2   :  { %v863_v9 = vpop.f32.mrb[9].mxu0  ;;  %v641_v11 = vadd.f32 %v723_v0, %v640_v8 }
 0x4b3   :  { %v643_v10 = vpop.f32.mrb[10].mxu0 }
 0x4b4   :  { %v644_v12 = vadd.f32 %v723_v0, %v643_v10  ;;  %v864_v13 = vpop.f32.mrb[11].mxu0 }
 0x4b6   :  { %v647_v14 = vpack.c.bf16 %v644_v12, %v641_v11 }
 0x4b8   :  { %740 = vst [vmem:[#allocation13] sm:$0xff] %v647_v14   ;;  %v657_v15 = vunpack.c.l.bf16 %v647_v14  ;;  %v658_v17 = vunpack.c.h.bf16 %v647_v14 }
 0x4ba   :  { %v659_v16 = vmul.f32 %v657_v15, %v657_v15  ;;  %v660_v18 = vmul.f32 %v658_v17, %v658_v17 }
 0x4bc   :  { %661 = vadd.xlane.f32.xlu0 %v659_v16 }
 0x4c0   :  { %663 = vadd.xlane.f32.xlu0 %v660_v18 }
 0x4c1   :  { %1053 = shalt.err (!%p1050_p10)
}
 0x4c2   :  { %s1054_s14 = scalar_lea.hbm %s1351_s11, 128 }
 0x4c3   :  { %p1055_p11 = scmp.ne.s32.totalorder %s1351_s11, %s1054_s14  ;;  %p1058_p12 = scmp.lt.u32.totalorder %s1054_s14, %s1351_s11 }
 0x4c5   :  { %p1060_p13 = pnand %p1058_p12, %p1055_p11 }
 0x4c7   :  { %1063 = shalt.err (!%p1060_p13)
}
 0x4c8   :  { %679 = dma.vmem_to_hbm [thread:$0]  %s674_s28, 128, %s1351_s11, [#allocation4], %s1076_s15, %s1076_s15, %s1077_s16   ;;  %vm665_vm2 = vcmask 7168  }
 0x549   :  { %v662_v19 = vpop.xlane.xlu0 %661 }
 0x54a   :  { %666 = vst.msk [vmem:[%s1352_s12] sm:$0xff] %vm665_vm2, %v662_v19 }
 0x54d   :  { %v664_v20 = vpop.xlane.xlu0 %663 }
 0x54e   :  { %667 = vst.msk [vmem:[%s1352_s12 + $0x8] sm:$0xff] %vm665_vm2, %v664_v20 }
 0x54f   :  { %1072 = dma.done.wait [#allocation4], 128  }
 0x550   :  { %1073 = vsyncadd [#allocation4], 4294967168 }
 0x551   :  { %687 = vsyncpa [#allocation3], 1 }
 0x552   :  { %688 = vsyncpa [#allocation6], 1 }
 0x553   :  { %689 = vsyncpa [#allocation9], 1 }
 0x554   :  { %690 = vsyncpa [#allocation12], 1 }
 0x555   :  { %691 = vsyncpa [#allocation4], 1 }

</bundles_post_ra>
